<compile_context>
chip_gen: v5e
topology: v5e:2x2
jax: 0.10.0
libtpu: 0.0.40
codegen_flags: <defaults>
</compile_context>

<pallas_src>
import jax
import jax.numpy as jnp
from jax import lax
from jax.experimental import pallas as pl
from jax.experimental.pallas import tpu as pltpu


def _round_up(x, m):
    return (x + m - 1) // m * m


def _tpu_vmem_budget():
    """Derive (block_budget_bytes, vmem_limit_bytes) for the local TPU."""
    phys = None
    try:
        info = pltpu.get_tpu_info()
        phys = int(getattr(info, "vmem_capacity_bytes", 0)) or None
    except Exception:
        phys = None
    if phys is None:
        phys = 64 * 1024 * 1024                  # conservative default (v7x per-TC)
    vmem_limit = (phys * 3) // 4                 # 48 MiB on v7x, 96 MiB on v5e/v6e
    # A streamed x block is double-buffered on both the input and the output
    # side (4x) plus weights / small temporaries -> keep a ~5x margin.
    block_budget = vmem_limit // 5
    return block_budget, vmem_limit


def _se_mlp(pooled, w1t, b1, w2, b2):
    """Squeeze-excite MLP on the VPU/XLU only (no degenerate MXU matvecs).

    pooled: (..., C, 1) f32 spatial *sums* (1/HW already folded into w1t).
    w1t: (C, Cr), b1: (1, Cr), w2: (C, Cr), b2: (C, 1).
    The channel axis stays on sublanes throughout, so the returned (..., C, 1)
    scale broadcasts straight over the spatial lanes with no relayout.
    """
    h = jnp.sum(pooled * w1t, axis=-2, keepdims=True) + b1      # (..., 1, Cr)
    h = jnp.maximum(h, 0.0)
    s = jnp.sum(h * w2, axis=-1, keepdims=True) + b2            # (..., C, 1)
    return jax.nn.sigmoid(s)


def _ca_fused_kernel(x_ref, w1t_ref, b1_ref, w2_ref, b2_ref, o_ref):
    # x_ref / o_ref: (nb, C, HW).  One pass: pool + MLP + scale.
    # Cast is fused into the reduce (no full-block f32 temp); the scale
    # multiply runs in the wire dtype.
    pooled = jnp.sum(x_ref[...], axis=2, keepdims=True, dtype=jnp.float32)
    s = _se_mlp(pooled, w1t_ref[...], b1_ref[...], w2_ref[...], b2_ref[...])
    o_ref[...] = x_ref[...] * s.astype(o_ref.dtype)


def _make_pool_scale_kernel(hw, thw):
    """Pass-1 kernel: accumulate pooled sums across spatial tiles and emit the
    sigmoid scale on the last tile (SE-MLP folded in; no separate launch)."""
    ragged = (hw % thw) != 0

    def kernel(x_ref, w1t_ref, b1_ref, w2_ref, b2_ref, s_ref, acc_ref):
        t = pl.program_id(1)

        @pl.when(t == 0)
        def _():
            acc_ref[...] = jnp.zeros_like(acc_ref)

        x = x_ref[...]                                       # (C, thw)
        if ragged:
            # Out-of-range input lanes of the last tile are undefined -> mask
            # them to zero before the pooled sum (true 1/HW folded into w1t).
            lane = lax.broadcasted_iota(jnp.int32, x.shape, 1)
            x = jnp.where(t * thw + lane < hw, x, jnp.zeros_like(x))
        acc_ref[...] += jnp.sum(x, axis=1, keepdims=True, dtype=jnp.float32)

        @pl.when(t == pl.num_programs(1) - 1)
        def _():
            s_ref[...] = _se_mlp(acc_ref[...], w1t_ref[...], b1_ref[...],
                                 w2_ref[...], b2_ref[...])

    return kernel


def _ca_apply_kernel(x_ref, s_ref, o_ref):
    # x_ref / o_ref: (C, thw); s_ref: (C, 1) f32 sigmoid scale broadcast over
    # the spatial lanes.  Out-of-range lanes of the last tile are discarded
    # when the output block is stored back.
    o_ref[...] = x_ref[...] * s_ref[...].astype(o_ref.dtype)


def ca_layer(x_nchw, w1, b1, w2, b2, *,
             block_budget_bytes=None, vmem_limit_bytes=None, force_tiled=False):
    """CALayer forward.

    x_nchw: (N, C, H, W); w1: (Cr, C); b1: (Cr,); w2: (C, Cr); b2: (C,).
    """
    N, C, H, W = x_nchw.shape
    Cr = w1.shape[0]
    HW = H * W
    out_dtype = x_nchw.dtype
    itemsize = jnp.dtype(out_dtype).itemsize

    if block_budget_bytes is None or vmem_limit_bytes is None:
        auto_budget, auto_limit = _tpu_vmem_budget()
        block_budget_bytes = block_budget_bytes or auto_budget
        vmem_limit_bytes = vmem_limit_bytes or auto_limit

    # Parameter prep (tiny): fold 1/HW into w1 so pooled *sums* feed the MLP
    # (masked pad lanes never perturb the mean); channel axis of both weights
    # stays on sublanes; biases as 2-D f32.  Constant index_maps keep the
    # weights VMEM-resident across the grid.
    w1t = (w1.astype(jnp.float32) * (1.0 / HW)).T            # (C, Cr)
    b1r = b1.astype(jnp.float32).reshape(1, Cr)
    w2f = w2.astype(jnp.float32)                             # (C, Cr)
    b2r = b2.astype(jnp.float32).reshape(C, 1)
    param_args = (w1t, b1r, w2f, b2r)
    param_bytes = (2 * C * Cr + Cr + C) * 4

    # VMEM accounting uses tile-padded sizes ((sublane, 128) layout tiles).
    sub = 8 if itemsize >= 4 else (16 if itemsize == 2 else 32)
    c_pad = _round_up(C, sub)
    per_image_bytes = c_pad * _round_up(HW, 128) * itemsize

    x = x_nchw.reshape(N, C, HW)
    use_fused = (not force_tiled) and per_image_bytes <= block_budget_bytes

    if use_fused:
        # ---- single fused pass: pool + MLP + scale (2x HBM traffic) --------
        nb_budget = max(1, block_budget_bytes // per_image_bytes)
        # Aim for >=4 grid steps when the batch allows it so the input DMA,
        # compute and output writeback pipeline, and both v7x cores get work.
        nb = int(max(1, min(nb_budget, pl.cdiv(N, 4))))
        grid_n = int(pl.cdiv(N, nb))
        cost = pl.CostEstimate(
            flops=2 * N * C * HW + 4 * N * C * Cr,
            transcendentals=N * C,
            bytes_accessed=2 * N * C * HW * itemsize + param_bytes)
        out = pl.pallas_call(
            _ca_fused_kernel,
            out_shape=jax.ShapeDtypeStruct((N, C, HW), out_dtype),
            grid_spec=pltpu.PrefetchScalarGridSpec(
                num_scalar_prefetch=0,
                grid=(grid_n,),
                in_specs=[
                    pl.BlockSpec((nb, C, HW), lambda b: (b, 0, 0)),
                    pl.BlockSpec((C, Cr), lambda b: (0, 0)),
                    pl.BlockSpec((1, Cr), lambda b: (0, 0)),
                    pl.BlockSpec((C, Cr), lambda b: (0, 0)),
                    pl.BlockSpec((C, 1), lambda b: (0, 0)),
                ],
                out_specs=pl.BlockSpec((nb, C, HW), lambda b: (b, 0, 0)),
            ),
            compiler_params=pltpu.CompilerParams(
                dimension_semantics=("parallel",),
                vmem_limit_bytes=vmem_limit_bytes,
            ),
            cost_estimate=cost,
        )(x, *param_args)
        return out.reshape(N, C, H, W)

    # ---- two-pass tiled pipeline (image too large for a single block) -------
    # Pass 2 streams an input and an output block per step; pass 1 streams only
    # an input block, so its spatial tile is 2x larger for free.
    lane_bytes = c_pad * itemsize * 128
    thw_apply = max(128, (block_budget_bytes // lane_bytes) * 128)
    thw_apply = min(thw_apply, _round_up(HW, 128))
    thw_pool = min(2 * thw_apply, _round_up(HW, 128))
    n_t_pool = int(pl.cdiv(HW, thw_pool))
    n_t_apply = int(pl.cdiv(HW, thw_apply))

    # Pass 1: pooled sums accumulated across spatial tiles ("arbitrary" axis),
    # SE-MLP + sigmoid emitted on the last tile.
    pool_cost = pl.CostEstimate(
        flops=N * C * HW + 4 * N * C * Cr,
        transcendentals=N * C,
        bytes_accessed=N * C * HW * itemsize + N * C * 4 + param_bytes)
    scale = pl.pallas_call(
        _make_pool_scale_kernel(HW, thw_pool),
        out_shape=jax.ShapeDtypeStruct((N, C, 1), jnp.float32),
        grid_spec=pltpu.PrefetchScalarGridSpec(
            num_scalar_prefetch=0,
            grid=(N, n_t_pool),
            in_specs=[
                pl.BlockSpec((pl.Squeezed(), C, thw_pool), lambda b, t: (b, 0, t)),
                pl.BlockSpec((C, Cr), lambda b, t: (0, 0)),
                pl.BlockSpec((1, Cr), lambda b, t: (0, 0)),
                pl.BlockSpec((C, Cr), lambda b, t: (0, 0)),
                pl.BlockSpec((C, 1), lambda b, t: (0, 0)),
            ],
            out_specs=pl.BlockSpec((pl.Squeezed(), C, 1), lambda b, t: (b, 0, 0)),
            scratch_shapes=[pltpu.VMEM((C, 1), jnp.float32)],
        ),
        compiler_params=pltpu.CompilerParams(
            dimension_semantics=("parallel", "arbitrary"),
            vmem_limit_bytes=vmem_limit_bytes,
        ),
        cost_estimate=pool_cost,
    )(x, *param_args)

    # Pass 2: apply the per-(n, c) sigmoid scale to every spatial tile.  Both
    # grid axes are independent -> "parallel" so both v7x cores get work even
    # at N == 1.
    apply_cost = pl.CostEstimate(
        flops=N * C * HW,
        transcendentals=0,
        bytes_accessed=2 * N * C * HW * itemsize + N * C * 4)
    out = pl.pallas_call(
        _ca_apply_kernel,
        out_shape=jax.ShapeDtypeStruct((N, C, HW), out_dtype),
        grid_spec=pltpu.PrefetchScalarGridSpec(
            num_scalar_prefetch=0,
            grid=(N, n_t_apply),
            in_specs=[
                pl.BlockSpec((pl.Squeezed(), C, thw_apply), lambda b, t: (b, 0, t)),
                pl.BlockSpec((pl.Squeezed(), C, 1), lambda b, t: (b, 0, 0)),
            ],
            out_specs=pl.BlockSpec((pl.Squeezed(), C, thw_apply), lambda b, t: (b, 0, t)),
        ),
        compiler_params=pltpu.CompilerParams(
            dimension_semantics=("parallel", "parallel"),
            vmem_limit_bytes=vmem_limit_bytes,
        ),
        cost_estimate=apply_cost,
    )(x, scale)
    return out.reshape(N, C, H, W)


def ca_layer_ref(x, w1, b1, w2, b2):
    """Pure-JAX reference matching the PyTorch forward."""
    y = jnp.mean(x, axis=(2, 3), keepdims=True)                 # (N, C, 1, 1)
    y = jnp.einsum('nchw,oc->nohw', y, w1) + b1[None, :, None, None]
    y = jnp.maximum(y, 0.0)
    y = jnp.einsum('nchw,oc->nohw', y, w2) + b2[None, :, None, None]
    y = jax.nn.sigmoid(y)
    return x * y


if __name__ == "__main__":
    # Small deterministic config: channel=32, reduction=16 -> hidden=2
    N, C = 2, 32
    reduction = 16
    Cr = C // reduction

    key = jax.random.PRNGKey(0)
    kx, kw1, kb1, kw2, kb2, kx2, kx3, kx4 = jax.random.split(key, 8)

    # Conv2d(C, C//r, 1) weight (Cr, C, 1, 1) -> (Cr, C); Conv2d(C//r, C, 1) -> (C, Cr)
    w1 = 0.1 * jax.random.normal(kw1, (Cr, C), dtype=jnp.float32)
    b1 = 0.1 * jax.random.normal(kb1, (Cr,), dtype=jnp.float32)
    w2 = 0.1 * jax.random.normal(kw2, (C, Cr), dtype=jnp.float32)
    b2 = 0.1 * jax.random.normal(kb2, (C,), dtype=jnp.float32)

    # Case 1: 16x16 image, fused single-pass path (whole image in one block).
    x = jax.random.normal(kx, (N, C, 16, 16), dtype=jnp.float32)
    ref = ca_layer_ref(x, w1, b1, w2, b2)
    out_fused = jax.block_until_ready(ca_layer(x, w1, b1, w2, b2))
    assert out_fused.shape == x.shape
    assert jnp.allclose(out_fused, ref, rtol=1e-5, atol=1e-5), "fused path mismatch"

    # Case 2: force the tiled two-pass path with a tiny block budget so the
    # multi-tile apply pass is exercised.
    out_tiled = jax.block_until_ready(
        ca_layer(x, w1, b1, w2, b2, force_tiled=True, block_budget_bytes=8 * 1024))
    assert jnp.allclose(out_tiled, ref, rtol=1e-5, atol=1e-5), "tiled path mismatch"

    # Case 3: bigger spatial extent so the pooled-sum accumulation spans
    # several spatial tiles (pool tile = 2x apply tile).
    x3 = jax.random.normal(kx3, (N, C, 8, 64), dtype=jnp.float32)
    ref3 = ca_layer_ref(x3, w1, b1, w2, b2)
    out3 = jax.block_until_ready(
        ca_layer(x3, w1, b1, w2, b2, force_tiled=True, block_budget_bytes=8 * 1024))
    assert jnp.allclose(out3, ref3, rtol=1e-5, atol=1e-5), "tiled accumulation mismatch"

    # Case 4: 7x7 image (HW=49, not a multiple of 128) -> no wrapper pad/slice;
    # fused path uses a full-extent last block dim, tiled path masks the ragged
    # tail lanes before the pooled sum.
    x2 = jax.random.normal(kx2, (N, C, 7, 7), dtype=jnp.float32)
    ref2 = ca_layer_ref(x2, w1, b1, w2, b2)
    out_pad = jax.block_until_ready(ca_layer(x2, w1, b1, w2, b2))
    assert jnp.allclose(out_pad, ref2, rtol=1e-5, atol=1e-5), "ragged fused mismatch"
    out_pad_tiled = jax.block_until_ready(
        ca_layer(x2, w1, b1, w2, b2, force_tiled=True))
    assert jnp.allclose(out_pad_tiled, ref2, rtol=1e-5, atol=1e-5), "ragged tiled mismatch"

    # Case 5: N=1, ragged HW, multi-tile tiled path (masking on a true
    # multi-tile accumulation, single-image grids).
    x4 = jax.random.normal(kx4, (1, C, 10, 30), dtype=jnp.float32)
    ref4 = ca_layer_ref(x4, w1, b1, w2, b2)
    out4 = jax.block_until_ready(
        ca_layer(x4, w1, b1, w2, b2, force_tiled=True, block_budget_bytes=8 * 1024))
    assert jnp.allclose(out4, ref4, rtol=1e-5, atol=1e-5), "ragged multi-tile mismatch"

    print("KERNEL_OK")
</pallas_src>

<mosaic_0001>
module attributes {stable_mosaic.version = 11 : i64} {
  func.func @_ca_fused_kernel(%arg0: i32, %arg1: memref<1x32x256xf32, #tpu.memory_space<vmem>>, %arg2: memref<32x2xf32, #tpu.memory_space<vmem>>, %arg3: memref<1x2xf32, #tpu.memory_space<vmem>>, %arg4: memref<32x2xf32, #tpu.memory_space<vmem>>, %arg5: memref<32x1xf32, #tpu.memory_space<vmem>>, %arg6: memref<1x32x256xf32, #tpu.memory_space<vmem>>) attributes {dimension_semantics = [#tpu.dimension_semantics<parallel>], iteration_bounds = array<i64: 2>, scalar_prefetch = 0 : i64, scratch_operands = 0 : i64, tpu.core_type = #tpu.core_type<tc>, window_params = [{transform_indices = @transform_0, window_bounds = array<i64: 1, 32, 256>}, {pipeline_mode = #tpu.pipeline_mode<synchronous>, transform_indices = @transform_1, window_bounds = array<i64: 32, 2>}, {pipeline_mode = #tpu.pipeline_mode<synchronous>, transform_indices = @transform_2, window_bounds = array<i64: 1, 2>}, {pipeline_mode = #tpu.pipeline_mode<synchronous>, transform_indices = @transform_3, window_bounds = array<i64: 32, 2>}, {pipeline_mode = #tpu.pipeline_mode<synchronous>, transform_indices = @transform_4, window_bounds = array<i64: 32, 1>}, {transform_indices = @transform_5, window_bounds = array<i64: 1, 32, 256>}]} {
    %c0 = arith.constant 0 : index
    %c0_0 = arith.constant 0 : index
    %c0_1 = arith.constant 0 : index
    %0 = vector.load %arg1[%c0, %c0_0, %c0_1] : memref<1x32x256xf32, #tpu.memory_space<vmem>>, vector<1x32x256xf32>
    %cst = arith.constant dense<0.000000e+00> : vector<1x32xf32>
    %1 = vector.multi_reduction <add>, %0, %cst [2] : vector<1x32x256xf32> to vector<1x32xf32>
    %2 = vector.shape_cast %1 : vector<1x32xf32> to vector<1x32x1xf32>
    %c0_2 = arith.constant 0 : index
    %c0_3 = arith.constant 0 : index
    %3 = vector.load %arg2[%c0_2, %c0_3] : memref<32x2xf32, #tpu.memory_space<vmem>>, vector<32x2xf32>
    %c0_4 = arith.constant 0 : index
    %c0_5 = arith.constant 0 : index
    %4 = vector.load %arg3[%c0_4, %c0_5] : memref<1x2xf32, #tpu.memory_space<vmem>>, vector<1x2xf32>
    %c0_6 = arith.constant 0 : index
    %c0_7 = arith.constant 0 : index
    %5 = vector.load %arg4[%c0_6, %c0_7] : memref<32x2xf32, #tpu.memory_space<vmem>>, vector<32x2xf32>
    %c0_8 = arith.constant 0 : index
    %c0_9 = arith.constant 0 : index
    %6 = vector.load %arg5[%c0_8, %c0_9] : memref<32x1xf32, #tpu.memory_space<vmem>>, vector<32x1xf32>
    %7 = vector.shape_cast %3 : vector<32x2xf32> to vector<1x32x2xf32>
    %8 = vector.broadcast %2 : vector<1x32x1xf32> to vector<1x32x2xf32>
    %9 = arith.mulf %8, %7 : vector<1x32x2xf32>
    %cst_10 = arith.constant dense<0.000000e+00> : vector<1x2xf32>
    %10 = vector.multi_reduction <add>, %9, %cst_10 [1] : vector<1x32x2xf32> to vector<1x2xf32>
    %11 = vector.shape_cast %10 : vector<1x2xf32> to vector<1x1x2xf32>
    %12 = vector.shape_cast %4 : vector<1x2xf32> to vector<1x1x2xf32>
    %13 = arith.addf %11, %12 : vector<1x1x2xf32>
    %cst_11 = arith.constant 0.000000e+00 : f32
    %14 = vector.broadcast %cst_11 : f32 to vector<1x1x2xf32>
    %15 = arith.maximumf %13, %14 : vector<1x1x2xf32>
    %16 = vector.shape_cast %5 : vector<32x2xf32> to vector<1x32x2xf32>
    %17 = vector.broadcast %15 : vector<1x1x2xf32> to vector<1x32x2xf32>
    %18 = arith.mulf %17, %16 : vector<1x32x2xf32>
    %cst_12 = arith.constant dense<0.000000e+00> : vector<1x32xf32>
    %19 = vector.multi_reduction <add>, %18, %cst_12 [2] : vector<1x32x2xf32> to vector<1x32xf32>
    %20 = vector.shape_cast %19 : vector<1x32xf32> to vector<1x32x1xf32>
    %21 = vector.shape_cast %6 : vector<32x1xf32> to vector<1x32x1xf32>
    %22 = arith.addf %20, %21 : vector<1x32x1xf32>
    %23 = arith.negf %22 : vector<1x32x1xf32>
    %24 = math.exp %23 : vector<1x32x1xf32>
    %cst_13 = arith.constant 1.000000e+00 : f32
    %25 = vector.broadcast %cst_13 : f32 to vector<1x32x1xf32>
    %26 = arith.addf %25, %24 : vector<1x32x1xf32>
    %27 = arith.divf %25, %26 : vector<1x32x1xf32>
    %c0_14 = arith.constant 0 : index
    %c0_15 = arith.constant 0 : index
    %c0_16 = arith.constant 0 : index
    %28 = vector.load %arg1[%c0_14, %c0_15, %c0_16] : memref<1x32x256xf32, #tpu.memory_space<vmem>>, vector<1x32x256xf32>
    %29 = vector.broadcast %27 : vector<1x32x1xf32> to vector<1x32x256xf32>
    %30 = arith.mulf %28, %29 : vector<1x32x256xf32>
    %c0_17 = arith.constant 0 : index
    %c0_18 = arith.constant 0 : index
    %c0_19 = arith.constant 0 : index
    %31 = vector.load %arg6[%c0_17, %c0_18, %c0_19] : memref<1x32x256xf32, #tpu.memory_space<vmem>>, vector<1x32x256xf32>
    tpu.vector_store %arg6[%c0_17, %c0_18, %c0_19], %30 {strides = array<i32>} : memref<1x32x256xf32, #tpu.memory_space<vmem>>, vector<1x32x256xf32>,
    return
  }
  func.func @transform_0(%arg0: i32) -> (i32, i32, i32) {
    %c0_i32 = arith.constant 0 : i32
    %c0_i32_0 = arith.constant 0 : i32
    %c0_i32_1 = arith.constant 0 : i32
    return %arg0, %c0_i32, %c0_i32_0 : i32, i32, i32
  }
  func.func @transform_1(%arg0: i32) -> (i32, i32) {
    %c0_i32 = arith.constant 0 : i32
    %c0_i32_0 = arith.constant 0 : i32
    %c0_i32_1 = arith.constant 0 : i32
    return %c0_i32, %c0_i32_0 : i32, i32
  }
  func.func @transform_2(%arg0: i32) -> (i32, i32) {
    %c0_i32 = arith.constant 0 : i32
    %c0_i32_0 = arith.constant 0 : i32
    %c0_i32_1 = arith.constant 0 : i32
    return %c0_i32, %c0_i32_0 : i32, i32
  }
  func.func @transform_3(%arg0: i32) -> (i32, i32) {
    %c0_i32 = arith.constant 0 : i32
    %c0_i32_0 = arith.constant 0 : i32
    %c0_i32_1 = arith.constant 0 : i32
    return %c0_i32, %c0_i32_0 : i32, i32
  }
  func.func @transform_4(%arg0: i32) -> (i32, i32) {
    %c0_i32 = arith.constant 0 : i32
    %c0_i32_0 = arith.constant 0 : i32
    %c0_i32_1 = arith.constant 0 : i32
    return %c0_i32, %c0_i32_0 : i32, i32
  }
  func.func @transform_5(%arg0: i32) -> (i32, i32, i32) {
    %c0_i32 = arith.constant 0 : i32
    %c0_i32_0 = arith.constant 0 : i32
    %c0_i32_1 = arith.constant 0 : i32
    return %arg0, %c0_i32, %c0_i32_0 : i32, i32, i32
  }
}

</mosaic_0001>

<bundles_post_ra>
// kernel: tpu_custom_call.1
= control target key start
LH: loop header
LB: loop body
LE: loop exit
PB: predicated region body
PF: predicated region fallthrough
CT: control target
= control target key end

     0   :  { %10 = vsyncpa [#allocation3], 0  ;;  %s953_s0 = inlined_call_operand.hbm [shape: f32[2,32,256], index: 0, kind: input, shape index: {}]   ;;  %s954_s1 = inlined_call_operand.vmem [shape: f32[32,2], index: 1, kind: input, shape index: {}]   ;;  %s955_s2 = inlined_call_operand.vmem [shape: f32[1,2], index: 2, kind: input, shape index: {}]   ;;  %s956_s3 = inlined_call_operand.vmem [shape: f32[32,2], index: 3, kind: input, shape index: {}]   ;;  %s957_s4 = inlined_call_operand.vmem [shape: f32[32,1], index: 4, kind: input, shape index: {}]   ;;  %s958_s5 = inlined_call_operand.hbm [shape: f32[2,32,256], index: 5, kind: output, shape index: {}]  }
   0x1   :  { %12 = vsyncpa [#allocation3 + $0x1], 0 }
   0x2   :  { %13 = vsyncpa [#allocation4], 0 }
   0x3   :  { %15 = vsyncpa [#allocation4 + $0x1], 0  ;;  %s743_s18 = smov 0   ;;  %s745_s19 = smov 0  }
   0x4   :  { %s747_s20 = smov 0   ;;  %s749_s21 = smov 0  }
   0x5 LB: > { %s764_s22 = sadd.s32 4294967295, %s706_s21   ;;  %s520_s23 = sadd.s32 4294967294, %s706_s21   ;;  %s706_s21 = sphi %s749_s21, %s968_s21   ;;  %s702_s20 = sphi %s747_s20, %s967_s20   ;;  %s698_s19 = sphi %s745_s19, %s966_s19   ;;  %s694_s18 = sphi %s743_s18, %s965_s18  }
   0x6   : > { %s768_s24 = sadd.s32 1, %s706_s21   ;;  %s28_s25 = sadd.s32 1, %s702_s20 }
   0x7   : > { %s25_s26 = ssub.s32 %s706_s21, %s768_s24  ;;  %p35_p0 = scmp.ne.s32.totalorder %s702_s20, %s698_s19 }
   0x8   : > { %p26_p1 = scmp.eq.s32.totalorder %s25_s26, 0  ;;  %p36_p2 = scmp.eq.s32.totalorder %s706_s21, 0 }
   0x9   : > { %p41_p3 = scmp.ne.s32.totalorder %s698_s19, %s694_s18  ;;  %p42_p4 = scmp.eq.s32.totalorder %s764_s22, 0 }
   0xa   : > { %s780_s27 = scalar_select %p26_p1, %s702_s20, %s28_s25  }
   0xb   : > { %p782_p5 = por %p36_p2, %p35_p0  ;;  %p786_p6 = por %p42_p4, %p41_p3 }
   0xc   : > { %p149_p7 = scmp.eq.s32.totalorder %s764_s22, 1  ;;  %p155_p8 = scmp.eq.s32.totalorder %s520_s23, 1 }
   0xd   : > { %p552_p10 = scmp.lt.s32.totalorder %s706_s21, 2  ;;  %s187_s7 = sand.u32 1, %s702_s20  }
   0xe   : > { %p793_p11 = por %p149_p7, %p35_p0  ;;  %p797_p12 = por %p155_p8, %p41_p3 }
   0xf   : > { %s538_s8 = sshll.u32 %s706_s21, 6  ;;  %s523_s9 = sshll.u32 %s187_s7, 6 }
  0x10   : > { %s196_s12 = scalar_lea.hbm %s953_s0, %s538_s8  ;;  %s191_s14 = scalar_lea.vmem [#allocation2], %s523_s9 }
  0x11   : > { %s197_s13 = sshll.u32 %s196_s12, 4  ;;  %s199_s15 = sshll.u32 %s191_s14, 4  ;;  %s198_s13 = int_to_ptr.hbm [resolvable:$true] %s197_s13  ;;  %s200_s15 = int_to_ptr.vmem [resolvable:$true] %s199_s15 }
  0x12   : > { %p808_p13 = pnand %p552_p10, %p782_p5  ;;  %p526_p0 = scmp.ge.s32.totalorder %s706_s21, 1 }
  0x13   : > { %p207_p1 = scmp.lt.s32.totalorder %s706_s21, 3  ;;  %s188_s17 = scalar_lea.sflag [#allocation3], %s187_s7 }
  0x14   : > { %s610_s23 = sshra.s32 %s198_s13, 4  ;;  %p614_p3 = pneg %p808_p13  ;;  %s611_s23 = int_to_ptr.hbm [resolvable:$true] %s610_s23 }
  0x15   : > { %s612_s25 = scalar_lea.hbm %s611_s23, 64  ;;  %s617_s28 = scalar_lea.hbm %s953_s0, 128 }
  0x16   : > { %p613_p2 = scmp.ne.s32.totalorder %s611_s23, %s612_s25  ;;  %p618_p5 = scmp.lt.s32.totalorder %s611_s23, %s953_s0 }
  0x17   : > { %p619_p8 = scmp.lt.s32.totalorder %s617_s28, %s612_s25 }
  0x18   : > { %p615_p4 = pnand %p614_p3, %p613_p2 }
  0x19   : > { %p620_p10 = por %p619_p8, %p618_p5 }
  0x1a   : > { %p616_p7 = pneg %p615_p4 }
  0x1c   : > { %p621_p9 = pnand %p620_p10, %p616_p7 }
  0x1e   : > { %624 = shalt.err (!%p621_p9)
}
  0x1f   : > { %s708_s7 = smov 256   ;;  %s709_s11 = smov 16  }
  0x20   : > { %547 = dma.hbm_to_vmem [thread:$0]  (!%p808_p13), %s198_s13, 1024, %s200_s15, %s188_s17, %s708_s7, %s708_s7, %s709_s11  }
  0x21   : > { %p208_p2 = pnand %p526_p0, %p207_p1 }
  0x22   : > { %s829_s12 = sand.u32 (!%p208_p2), 1, %s698_s19  }
  0x23   : > { %211 = sbr.rel (%p208_p2) target bundleno = 478 (0x1de), region = 40  ;;  %s527_s14 = sshll.u32 (!%p208_p2), %s829_s12, 6 }
  0x24   : > { %s214_s23 = scalar_lea.sflag (!%p208_p2), [#allocation3], %s829_s12  ;;  %s217_s25 = scalar_lea.vmem (!%p208_p2), [#allocation2], %s527_s14 }
  0x28   : > { %685 = dma.done.wait (%p786_p6), %s214_s23, 1024  }
  0x29   : > { %687 = vsyncadd (%p786_p6), %s214_s23, 4294966272  ;;  %v839_v0 = vld [vmem:[%s217_s25] sm:$0xff]  ;;  %v841_v1 = vld [vmem:[%s217_s25 + $0x8] sm:$0xff]  ;;  %vm282_vm0 = vcmask 15360   ;;  %v710_v53 = vmov 0   ;;  %s244_s23 = scalar_lea.vmem [#allocation5], %s527_s14 }
  0x2a   : > { %v843_v2 = vld [vmem:[%s217_s25 + $0x20] sm:$0xff]  ;;  %v253_v3 = vadd.f32 %v841_v1, %v839_v0  ;;  %v847_v4 = vld [vmem:[%s217_s25 + $0x28] sm:$0xff]  ;;  %v851_v6 = vld [vmem:[%s217_s25 + $0x10] sm:$0xff]  ;;  %593 = vset.pattern.permute.xlu1 %v710_v53  ;;  %591 = vset.pattern.permute.xlu2 %v710_v53  ;;  %s444_s15 = sshll.u32 %s244_s23, 4  ;;  %s432_s17 = scalar_lea.sflag [#allocation4], %s829_s12  ;;  %s445_s15 = int_to_ptr.vmem [resolvable:$true] %s444_s15 }
  0x2b   : > { %v259_v5 = vadd.f32 %v847_v4, %v843_v2  ;;  %v853_v7 = vld [vmem:[%s217_s25 + $0x18] sm:$0xff]  ;;  %v855_v8 = vld [vmem:[%s217_s25 + $0x30] sm:$0xff]  ;;  %v265_v14 = vld [vmem:[%s954_s1] sm:$0xff]  ;;  %592 = vset.pattern.permute.xlu0 %v710_v53  ;;  %s660_s9 = scalar_lea.hbm %s958_s5, 128 }
  0x2c   : > { %254 = vadd.xlane.f32.xlu0 %v253_v3  ;;  %v857_v9 = vld [vmem:[%s217_s25 + $0x38] sm:$0xff]  ;;  %v256_v10 = vadd.f32 %v853_v7, %v851_v6  ;;  %v267_v15 = vld [vmem:[%s954_s1 + $0x10] sm:$0xff]  ;;  %v266_v16 = vld [vmem:[%s954_s1 + $0x8] sm:$0xff]  ;;  %s539_s25 = sshll.u32 %s764_s22, 6 }
  0x2d   : > { %260 = vadd.xlane.f32.xlu1 %v259_v5  ;;  %v262_v11 = vadd.f32 %v857_v9, %v855_v8  ;;  %v268_v18 = vld [vmem:[%s954_s1 + $0x18] sm:$0xff]  ;;  %v269_v36 = vld [vmem:[%s955_s2] sm:$0x1]  ;;  %v272_v41 = vld [vmem:[%s956_s3 + $0x10] sm:$0xff]  ;;  %s443_s13 = scalar_lea.hbm %s958_s5, %s539_s25 }
  0x2e   : > { %v273_v40 = vld [vmem:[%s956_s3 + $0x18] sm:$0xff]  ;;  %v270_v42 = vld [vmem:[%s956_s3] sm:$0xff]  ;;  %v271_v50 = vld [vmem:[%s956_s3 + $0x8] sm:$0xff]  ;;  %s446_s16 = sshll.u32 %s443_s13, 4  ;;  %s447_s16 = int_to_ptr.hbm [resolvable:$true] %s446_s16 }
  0x2f   : > { %v277_v54 = vld [vmem:[%s957_s4 + $0x18] sm:$0xff]  ;;  %v276_v55 = vld [vmem:[%s957_s4 + $0x10] sm:$0xff]  ;;  %v274_v56 = vld [vmem:[%s957_s4] sm:$0xff]  ;;  %s654_s26 = sshra.s32 %s447_s16, 4  ;;  %s655_s26 = int_to_ptr.hbm [resolvable:$true] %s654_s26 }
  0x30   : > { %s656_s22 = scalar_lea.hbm %s655_s26, 64  ;;  %p661_p0 = scmp.lt.s32.totalorder %s655_s26, %s958_s5 }
  0x31   : > { %p657_p6 = scmp.ne.s32.totalorder %s655_s26, %s656_s22  ;;  %p662_p1 = scmp.lt.s32.totalorder %s660_s9, %s656_s22 }
  0x33   : > { %p658_p9 = pnand %p657_p6, %p793_p11  ;;  %p663_p3 = por %p662_p1, %p661_p0 }
  0x34   : > { %257 = vadd.xlane.f32.xlu0 %v256_v10  ;;  %v275_v10 = vld [vmem:[%s957_s4 + $0x8] sm:$0xff] }
  0x35   : > { %263 = vadd.xlane.f32.xlu1 %v262_v11  ;;  %p659_p13 = pneg %p658_p9 }
  0x37   : > { %p664_p4 = pnand %p663_p3, %p659_p13 }
  0x9f   : > { %v255_v12 = vpop.xlane.xlu0 %254 }
  0xa0   : > { %v261_v13 = vpop.xlane.xlu1 %260  ;;  %v278_v17 = vmul.f32 %v265_v14, %v255_v12 }
  0xa1   : > { %v280_v20 = vmul.f32 %v267_v15, %v261_v13 }
  0xa2   : > { %v283_v24 = vsel %vm282_vm0, %v278_v17, 0.0 }
  0xa3   : > { %v286_v27 = vsel %vm282_vm0, %v280_v20, 0.0 }
  0xa7   : > { %v258_v19 = vpop.xlane.xlu0 %257 }
  0xa8   : > { %v279_v21 = vmul.f32 %v266_v16, %v258_v19  ;;  %v264_v22 = vpop.xlane.xlu1 %263 }
  0xa9   : > { %v281_v23 = vmul.f32 %v268_v18, %v264_v22 }
  0xaa   : > { %v284_v25 = vsel %vm282_vm0, %v279_v21, 0.0 }
  0xab   : > { %v285_v26 = vadd.f32 %v284_v25, %v283_v24  ;;  %v288_v28 = vsel %vm282_vm0, %v281_v23, 0.0 }
  0xad   : > { %v287_v29 = vadd.f32 %v286_v27, %v285_v26 }
  0xaf   : > { %v289_v30 = vadd.f32 %v288_v28, %v287_v29 }
  0xb1   : > { %v290_v31 = vrot.slane %v289_v30, 4 }
  0xb3   : > { %v291_v32 = vadd.f32 %v290_v31, %v289_v30 }
  0xb5   : > { %v292_v33 = vrot.slane %v291_v32, 2 }
  0xb7   : > { %v293_v34 = vadd.f32 %v292_v33, %v291_v32 }
  0xb9   : > { %v294_v35 = vrot.slane %v293_v34, 1 }
  0xbb   : > { %v295_v37 = vadd.f32 %v294_v35, %v293_v34 }
  0xbd   : > { %v296_v38 = vadd.f32 %v295_v37, %v269_v36 }
  0xbf   : > { %v297_v39 = vmax.f32 %v296_v38, 0.0 }
  0xc1   : > { %v298_v43 = vperm.slane %v297_v39, 0 }
  0xc3   : > { %v302_v44 = vmul.f32 %v298_v43, %v273_v40  ;;  %v301_v45 = vmul.f32 %v298_v43, %v272_v41  ;;  %v299_v46 = vmul.f32 %v298_v43, %v270_v42  ;;  %v300_v51 = vmul.f32 %v298_v43, %v271_v50 }
  0xc5   : > { %v312_v47 = vsel %vm282_vm0, %v302_v44, 0.0  ;;  %v309_v48 = vsel %vm282_vm0, %v301_v45, 0.0  ;;  %v303_v49 = vsel %vm282_vm0, %v299_v46, 0.0  ;;  %v306_v52 = vsel %vm282_vm0, %v300_v51, 0.0 }
  0xc6   : > { %313 = vadd.xlane.f32.xlu1 %v312_v47  ;;  %310 = vadd.xlane.f32.xlu0 %v309_v48 }
  0xc7   : > { %304 = vadd.xlane.f32.xlu2 %v303_v49 }
  0xcf   : > { %307 = vadd.xlane.f32.xlu2 %v306_v52 }
 0x139   : > { %v314_v57 = vpop.xlane.xlu1 %313  ;;  %v311_v58 = vpop.xlane.xlu0 %310 }
 0x13a   : > { %v318_v59 = vadd.f32 %v314_v57, %v277_v54  ;;  %v317_v60 = vadd.f32 %v311_v58, %v276_v55  ;;  %v305_v61 = vpop.xlane.xlu2 %304 }
 0x13b   : > { %v315_v62 = vadd.f32 %v305_v61, %v274_v56 }
 0x13c   : > { %v532_v63 = vmul.f32 -1.442695, %v318_v59  ;;  %v531_v3 = vmul.f32 -1.442695, %v317_v60 }
 0x13d   : > { %v529_v5 = vmul.f32 -1.442695, %v315_v62 }
 0x13e   : > { %594 = vpow2.f32 %v532_v63 }
 0x13f   : > { %596 = vpow2.f32 %v531_v3 }
 0x140   : > { %598 = vpow2.f32 %v529_v5 }
 0x142   : > { %v308_v11 = vpop.xlane.xlu2 %307 }
 0x143   : > { %v316_v12 = vadd.f32 %v308_v11, %v275_v10 }
 0x144   : > { %v595_v13 = vpop.eup %594 }
 0x145   : > { %v597_v14 = vpop.eup %596  ;;  %v334_v15 = vadd.f32 1.0, %v595_v13  ;;  %v530_v18 = vmul.f32 -1.442695, %v316_v12 }
 0x146   : > { %v599_v16 = vpop.eup %598  ;;  %v333_v17 = vadd.f32 1.0, %v597_v14 }
 0x147   : > { %600 = vrcp.f32 %v334_v15  ;;  %v331_v19 = vadd.f32 1.0, %v599_v16  ;;  %v391_v49 = vand.u32 2147483648, %v334_v15  ;;  %vm385_vm10 = vweird.f32 %v334_v15 }
 0x148   : > { %602 = vrcp.f32 %v333_v17  ;;  %v374_v29 = vand.u32 2147483647, %v333_v17  ;;  %v376_v30 = vand.u32 2147483648, %v333_v17  ;;  %vm370_vm3 = vweird.f32 %v333_v17 }
 0x149   : > { %604 = vrcp.f32 %v331_v19  ;;  %v346_v34 = vand.u32 2147483648, %v331_v19  ;;  %v344_v36 = vand.u32 2147483647, %v331_v19  ;;  %vm340_vm5 = vweird.f32 %v331_v19 }
 0x14a   : > { %606 = vpow2.f32 %v530_v18  ;;  %v377_v38 = vor.u32 1.1754944e-38, %v376_v30  ;;  %vm375_vm6 = vcmp.eq.f32.partialorder %v374_v29, 8.507059e+37  ;;  %v389_v50 = vand.u32 2147483647, %v334_v15 }
 0x14b   : > { %v347_v42 = vor.u32 1.1754944e-38, %v346_v34  ;;  %vm345_vm8 = vcmp.eq.f32.partialorder %v344_v36, 8.507059e+37  ;;  %v392_v56 = vor.u32 1.1754944e-38, %v391_v49 }
 0x14c   : > { %vm390_vm13 = vcmp.eq.f32.partialorder %v389_v50, 8.507059e+37 }
 0x14d   : > { %v601_v20 = vpop.eup %600 }
 0x14e   : > { %v603_v21 = vpop.eup %602  ;;  %v381_v22 = vmul.f32 %v601_v20, %v334_v15  ;;  %vm386_vm9 = vweird.f32 %v601_v20 }
 0x14f   : > { %v605_v23 = vpop.eup %604  ;;  %v366_v24 = vmul.f32 %v603_v21, %v333_v17  ;;  %vm371_vm1 = vweird.f32 %v603_v21  ;;  %vm387_vm11 = vmor %vm385_vm10, %vm386_vm9 }
 0x150   : > { %v607_v25 = vpop.eup %606  ;;  %v336_v26 = vmul.f32 %v605_v23, %v331_v19  ;;  %v382_v32 = vsub.f32 1.0, %v381_v22  ;;  %vm341_vm2 = vweird.f32 %v605_v23  ;;  %vm372_vm4 = vmor %vm370_vm3, %vm371_vm1 }
 0x151   : > { %v332_v27 = vadd.f32 1.0, %v607_v25  ;;  %v367_v28 = vsub.f32 1.0, %v366_v24  ;;  %vm342_vm7 = vmor %vm340_vm5, %vm341_vm2 }
 0x152   : > { %v337_v31 = vsub.f32 1.0, %v336_v26  ;;  %v383_v40 = vmul.f32 %v601_v20, %v382_v32 }
 0x153   : > { %608 = vrcp.f32 %v332_v27  ;;  %v368_v33 = vmul.f32 %v603_v21, %v367_v28  ;;  %v361_v52 = vand.u32 2147483648, %v332_v27  ;;  %v359_v55 = vand.u32 2147483647, %v332_v27 }
 0x154   : > { %v338_v35 = vmul.f32 %v605_v23, %v337_v31  ;;  %v384_v47 = vadd.f32 %v601_v20, %v383_v40  ;;  %vm355_vm14 = vweird.f32 %v332_v27 }
 0x155   : > { %v369_v37 = vadd.f32 %v603_v21, %v368_v33  ;;  %v362_v59 = vor.u32 1.1754944e-38, %v361_v52  ;;  %vm360_vm0 = vcmp.eq.f32.partialorder %v359_v55, 8.507059e+37 }
 0x156   : > { %v339_v39 = vadd.f32 %v605_v23, %v338_v35  ;;  %v388_v53 = vsel %vm387_vm11, %v601_v20, %v384_v47 }
 0x157   : > { %v373_v41 = vsel %vm372_vm4, %v603_v21, %v369_v37  ;;  %v393_v58 = vsel %vm390_vm13, %v392_v56, %v388_v53 }
 0x158   : > { %v378_v43 = vsel %vm375_vm6, %v377_v38, %v373_v41  ;;  %v343_v44 = vsel %vm342_vm7, %v605_v23, %v339_v39 }
 0x159   : > { %v609_v45 = vpop.eup %608  ;;  %407 = vperm.xlu1 %593, %v378_v43   ;;  %v348_v46 = vsel %vm345_vm8, %v347_v42, %v343_v44 }
 0x15a   : > { %397 = vperm.xlu2 %591, %v348_v46   ;;  %v351_v48 = vmul.f32 %v609_v45, %v332_v27  ;;  %vm356_vm12 = vweird.f32 %v609_v45 }
 0x15b   : > { %vm357_vm15 = vmor %vm355_vm14, %vm356_vm12 }
 0x15c   : > { %v352_v51 = vsub.f32 1.0, %v351_v48 }
 0x15e   : > { %v353_v54 = vmul.f32 %v609_v45, %v352_v51 }
 0x160   : > { %v354_v57 = vadd.f32 %v609_v45, %v353_v54 }
 0x162   : > { %412 = vperm.xlu2 %591, %v393_v58   ;;  %v358_v60 = vsel %vm357_vm15, %v609_v45, %v354_v57 }
 0x163   : > { %v363_v61 = vsel %vm360_vm0, %v362_v59, %v358_v60 }
 0x164   : > { %402 = vperm.xlu0 %592, %v363_v61  }
 0x1b4   : > { %v398_v62 = vpop.permute.xlu2 %397 }
 0x1b5   : > { %v415_v63 = vmul.f32 %v398_v62, %v839_v0  ;;  %v416_v3 = vmul.f32 %v398_v62, %v841_v1 }
 0x1b7   : > { %423 = vst [vmem:[%s244_s23] sm:$0xff] %v415_v63 }
 0x1b8   : > { %424 = vst [vmem:[%s244_s23 + $0x8] sm:$0xff] %v416_v3 }
 0x1bc   : > { %v413_v5 = vpop.permute.xlu2 %412 }
 0x1bd   : > { %v421_v10 = vmul.f32 %v413_v5, %v855_v8  ;;  %v422_v11 = vmul.f32 %v413_v5, %v857_v9 }
 0x1bf   : > { %429 = vst [vmem:[%s244_s23 + $0x30] sm:$0xff] %v421_v10 }
 0x1c0   : > { %430 = vst [vmem:[%s244_s23 + $0x38] sm:$0xff] %v422_v11 }
 0x1cb   : > { %v408_v12 = vpop.permute.xlu1 %407 }
 0x1cc   : > { %v419_v13 = vmul.f32 %v408_v12, %v843_v2  ;;  %v420_v14 = vmul.f32 %v408_v12, %v847_v4 }
 0x1ce   : > { %427 = vst [vmem:[%s244_s23 + $0x20] sm:$0xff] %v419_v13 }
 0x1cf   : > { %428 = vst [vmem:[%s244_s23 + $0x28] sm:$0xff] %v420_v14 }
 0x1d6   : > { %v403_v0 = vpop.permute.xlu0 %402 }
 0x1d7   : > { %v417_v1 = vmul.f32 %v403_v0, %v851_v6  ;;  %v418_v8 = vmul.f32 %v403_v0, %v853_v7 }
 0x1d9   : > { %425 = vst [vmem:[%s244_s23 + $0x10] sm:$0xff] %v417_v1 }
 0x1da   : > { %426 = vst [vmem:[%s244_s23 + $0x18] sm:$0xff] %v418_v8 }
 0x1db   : > { %667 = shalt.err (!%p664_p4)
}
 0x1dc   : > { %s711_s12 = smov 256   ;;  %s712_s11 = smov 16  }
 0x1dd   : > { %542 = dma.vmem_to_hbm [thread:$0]  (%p793_p11), %s445_s15, 1024, %s447_s16, %s432_s17, %s711_s12, %s711_s12, %s712_s11  }
 0x1de PF: > { %s461_s23 = sand.u32 1, %s694_s18   ;;  %p964_p7 = scmp.ge.s32.totalorder %s706_s21, 2 }
 0x1df   : > { %s462_s25 = scalar_lea.sflag [#allocation4], %s461_s23 }
 0x1e0   : > { %p549_p5 = pnand %p964_p7, %p797_p12 }
 0x1e2   : > { %p550_p8 = pneg %p549_p5 }
 0x1e4   : > { %689 = dma.done.wait (%p550_p8), %s462_s25, 1024  }
 0x1e5   : > { %691 = vsyncadd (%p550_p8), %s462_s25, 4294966272  ;;  %p18_p10 = scmp.ge.s32.totalorder %s768_s24, 4   ;;  %s965_s18 = smov %s698_s19 }
 0x1e6   : > { %s966_s19 = smov %s702_s20  ;;  %s967_s20 = smov %s780_s27 }
 0x1e7   : > { %s968_s21 = smov %s768_s24  ;;  %20 = sbr.rel (!%p18_p10) target bundleno = 5 (0x5), region = 85 }
 0x1ec   :  { %468 = vsyncpa [#allocation3], 1 }
 0x1ed   :  { %470 = vsyncpa [#allocation3 + $0x1], 1 }
 0x1ee   :  { %471 = vsyncpa [#allocation4], 1 }
 0x1ef   :  { %473 = vsyncpa [#allocation4 + $0x1], 1 }

</bundles_post_ra>
